<compile_context>
chip_gen: v7x
topology: tpu7x:2x2x1
jax: 0.10.0
libtpu: 0.0.40
codegen_flags: <defaults>
</compile_context>

<pallas_src>
import functools

import jax
import jax.numpy as jnp
from jax.experimental import pallas as pl
from jax.experimental.pallas import tpu as pltpu

NCLASS_PAD = 128                       # lane-dense weight-slab width (MXU-friendly)
_XLA_FALLBACK_BYTES = 1 << 20          # below this, plain XLA beats a kernel launch
_W_SINGLE_BUFFER_BYTES = 2 << 20       # single-buffer the resident weight slab above this


def _vmem_caps():
    """Return (tile budget, vmem_limit_bytes), generation-aware.

    128 MiB parts (v5e/v6e): ~56 MiB budget / 64 MiB limit.
    64 MiB parts (v7x):      ~24 MiB budget / 32 MiB limit.
    """
    try:
        cap = int(pltpu.get_tpu_info().vmem_capacity_bytes)
    except Exception:
        cap = 64 * 1024 * 1024         # conservative: assume the smallest (v7x)
    limit = min(max(cap // 2, 32 * 1024 * 1024), 64 * 1024 * 1024)
    return limit - 8 * 1024 * 1024, limit


def _round_up(x, m):
    return ((x + m - 1) // m) * m


def _pick_tm(B, D, budget, w_bufs, itemsize):
    """Pick the batch-tile size.

    Big enough to amortize ~0.35 us/grid-step (>= ~4 MiB of x per step for small D),
    small enough that the double-buffered pipeline fits the VMEM budget, and split
    >= 2 ways so both v7x TensorCores get work (harmless on single-TC v5e/v6e).
    """
    per_row = 2 * D * itemsize + 2 * NCLASS_PAD * 4     # x tile (x2 bufs) + f32 out tile (x2)
    fixed = w_bufs * D * NCLASS_PAD * itemsize          # resident weight slab
    avail = budget - fixed
    if avail <= 0:
        return None                                      # D too large: would need K-tiling
    tm_cap = max(1024, (4 << 20) // max(D * itemsize, 1))
    tm = min(avail // per_row, tm_cap)
    tm = (tm // 8) * 8                                   # sublane-aligned block shape
    if tm < 8:
        return None
    if B >= 16:
        tm = min(tm, _round_up(pl.cdiv(B, 2), 8))        # >= 2 grid steps (v7x megacore)
    if B >= 8:
        tm = min(tm, (B // 8) * 8)                       # keep block <= array extent
    else:
        tm = B                                           # tiny batch: block = whole array
    return max(tm, 1)


def _clf_kernel(nclass, x_ref, wt_ref, o_ref):
    # Dropout (eval mode) = identity.  One MXU matmul per (tm, D) batch tile;
    # only the real nclass columns are stored (narrow HBM writeback).
    acc = jnp.dot(x_ref[...], wt_ref[...], preferred_element_type=jnp.float32)
    o_ref[...] = acc[:, :nclass].astype(o_ref.dtype)


def clf_forward(x, weight, *, force_pallas=False, compute_dtype=None):
    """x: (B, nparams); weight: (nclass, nparams) -> (B, nclass).

    compute_dtype: optional (e.g. jnp.bfloat16) to halve the x HBM read on v5e;
    accumulation stays f32.  Default: x.dtype.
    """
    B, D = x.shape
    nclass, D2 = weight.shape
    assert D == D2

    cdt = jnp.dtype(compute_dtype) if compute_dtype is not None else jnp.dtype(x.dtype)
    itemsize = cdt.itemsize

    budget, vmem_limit = _vmem_caps()
    w_bytes = D * NCLASS_PAD * itemsize
    w_bufs = 1 if w_bytes > _W_SINGLE_BUFFER_BYTES else 2

    tm = _pick_tm(B, D, budget, w_bufs, itemsize)
    # Tiny problems (or a D so huge it would need K-tiling): let XLA handle it.
    if (not force_pallas and B * D * x.dtype.itemsize < _XLA_FALLBACK_BYTES) or tm is None:
        return x @ weight.T

    x_in = x.astype(cdt) if cdt != x.dtype else x
    # Lane-dense (D, 128) slab: transpose folded in, zero-padded past the real classes.
    wt = jnp.pad(weight.T.astype(cdt), ((0, 0), (0, NCLASS_PAD - nclass)))

    w_spec_kwargs = {}
    if w_bufs == 1:
        # Constant index_map -> the weight never re-DMAs; the 2nd buffer is dead VMEM.
        w_spec_kwargs["pipeline_mode"] = pl.Buffered(1)

    out = pl.pallas_call(
        functools.partial(_clf_kernel, nclass),
        out_shape=jax.ShapeDtypeStruct((B, nclass), jnp.float32),
        grid_spec=pltpu.PrefetchScalarGridSpec(
            num_scalar_prefetch=0,
            grid=(pl.cdiv(B, tm),),                       # ragged last block is masked
            in_specs=[
                pl.BlockSpec((tm, D), lambda i: (i, 0)),              # x: tiled over batch
                pl.BlockSpec((D, NCLASS_PAD), lambda i: (0, 0),       # weight: resident
                             **w_spec_kwargs),
            ],
            out_specs=pl.BlockSpec((tm, nclass), lambda i: (i, 0)),   # narrow store
        ),
        compiler_params=pltpu.CompilerParams(
            dimension_semantics=("parallel",),            # rows independent -> megacore OK
            vmem_limit_bytes=vmem_limit,
        ),
    )(x_in, wt)

    return out.astype(x.dtype) if out.dtype != x.dtype else out


if __name__ == "__main__":
    # Small shapes consistent with the module: nparams=32, 10 classes.
    B, NPARAMS, NCLASS = 128, 32, 10

    key = jax.random.PRNGKey(0)
    kx, kw = jax.random.split(key)
    x = jax.random.normal(kx, (B, NPARAMS), dtype=jnp.float32)

    # Module-faithful init (weight.data.zero_()) ...
    w_zero = jnp.zeros((NCLASS, NPARAMS), dtype=jnp.float32)
    # ... plus a random weight so layout/indexing errors are actually detectable.
    w_rand = jax.random.normal(kw, (NCLASS, NPARAMS), dtype=jnp.float32)

    # force_pallas=True so the kernel path (not the tiny-shape XLA fallback) is exercised.
    out_zero = jax.block_until_ready(clf_forward(x, w_zero, force_pallas=True))
    out_rand = jax.block_until_ready(clf_forward(x, w_rand, force_pallas=True))

    assert out_zero.shape == (B, NCLASS)
    assert out_rand.shape == (B, NCLASS)
    assert jnp.allclose(out_zero, x @ w_zero.T, atol=1e-5), "mismatch vs reference (zero W)"
    assert jnp.allclose(out_rand, x @ w_rand.T, atol=1e-4, rtol=1e-4), "mismatch vs reference (rand W)"

    # Ragged batch (B % tm != 0): verifies the masked final-block path.
    xr = x[:100]
    out_r = jax.block_until_ready(clf_forward(xr, w_rand, force_pallas=True))
    assert out_r.shape == (100, NCLASS)
    assert jnp.allclose(out_r, xr @ w_rand.T, atol=1e-4, rtol=1e-4), "mismatch (ragged batch)"

    print("KERNEL_OK")
</pallas_src>

<mosaic_0001>
module attributes {stable_mosaic.version = 11 : i64} {
  func.func @_clf_kernel(%arg0: i32, %arg1: memref<64x32xf32, #tpu.memory_space<vmem>>, %arg2: memref<32x128xf32, #tpu.memory_space<vmem>>, %arg3: memref<64x10xf32, #tpu.memory_space<vmem>>) attributes {dimension_semantics = [#tpu.dimension_semantics<parallel>], iteration_bounds = array<i64: 2>, scalar_prefetch = 0 : i64, scratch_operands = 0 : i64, tpu.core_type = #tpu.core_type<tc>, window_params = [{transform_indices = @transform_0, window_bounds = array<i64: 64, 32>}, {pipeline_mode = #tpu.pipeline_mode<synchronous>, transform_indices = @transform_1, window_bounds = array<i64: 32, 128>}, {transform_indices = @transform_2, window_bounds = array<i64: 64, 10>}]} {
    %c0 = arith.constant 0 : index
    %c0_0 = arith.constant 0 : index
    %0 = vector.load %arg1[%c0, %c0_0] : memref<64x32xf32, #tpu.memory_space<vmem>>, vector<64x32xf32>
    %c0_1 = arith.constant 0 : index
    %c0_2 = arith.constant 0 : index
    %1 = vector.load %arg2[%c0_1, %c0_2] : memref<32x128xf32, #tpu.memory_space<vmem>>, vector<32x128xf32>
    %cst = arith.constant dense<0.000000e+00> : vector<64x128xf32>
    %2 = tpu.matmul %0, %1, %cst {dimension_numbers = #tpu.dot_dimension_numbers<[1], [0], [0], [1], [0, 0, 1, 1], [], []>} : vector<64x32xf32>, vector<32x128xf32>, vector<64x128xf32> -> vector<64x128xf32>
    %3 = vector.extract_strided_slice %2 {offsets = [0, 0], sizes = [64, 10], strides = [1, 1]} : vector<64x128xf32> to vector<64x10xf32>
    %c0_3 = arith.constant 0 : index
    %c0_4 = arith.constant 0 : index
    %4 = vector.load %arg3[%c0_3, %c0_4] : memref<64x10xf32, #tpu.memory_space<vmem>>, vector<64x10xf32>
    tpu.vector_store %arg3[%c0_3, %c0_4], %3 {strides = array<i32>} : memref<64x10xf32, #tpu.memory_space<vmem>>, vector<64x10xf32>,
    return
  }
  func.func @transform_0(%arg0: i32) -> (i32, i32) {
    %c0_i32 = arith.constant 0 : i32
    %c0_i32_0 = arith.constant 0 : i32
    return %arg0, %c0_i32 : i32, i32
  }
  func.func @transform_1(%arg0: i32) -> (i32, i32) {
    %c0_i32 = arith.constant 0 : i32
    %c0_i32_0 = arith.constant 0 : i32
    %c0_i32_1 = arith.constant 0 : i32
    return %c0_i32, %c0_i32_0 : i32, i32
  }
  func.func @transform_2(%arg0: i32) -> (i32, i32) {
    %c0_i32 = arith.constant 0 : i32
    %c0_i32_0 = arith.constant 0 : i32
    return %arg0, %c0_i32 : i32, i32
  }
}

</mosaic_0001>

<bundles_post_ra>
// kernel: tpu_custom_call.1
= control target key start
LH: loop header
LB: loop body
LE: loop exit
PB: predicated region body
PF: predicated region fallthrough
CT: control target
= control target key end

     0   :  { %s448_s9 = smov 0   ;;  %s493_s0 = inlined_call_operand.vmem [shape: f32[128,32], index: 0, kind: input, shape index: {}]   ;;  %s494_s1 = inlined_call_operand.vmem [shape: f32[32,128], index: 1, kind: input, shape index: {}]   ;;  %s495_s2 = inlined_call_operand.vmem [shape: f32[128,10], index: 2, kind: output, shape index: {}]  }
   0x1 LB: > { %s354_s10 = sadd.s32 4294967295, %s431_s9   ;;  %p358_p0 = scmp.ge.s32.totalorder %s431_s9, 1  ;;  %s431_s9 = sphi %s448_s9, %s12_s9  }
   0x2   : > { %p113_p1 = scmp.lt.s32.totalorder %s431_s9, 3 }
   0x4   : > { %p114_p2 = pnand %p358_p0, %p113_p1 }
   0x5   : > { %v155_v0 = vld [vmem:[%s494_s1] sm:$0xff] (!%p114_p2)  ;;  %v156_v1 = vld [vmem:[%s494_s1 + $0x8] sm:$0xff] (!%p114_p2)  ;;  %v157_v2 = vld [vmem:[%s494_s1 + $0x10] sm:$0xff] (!%p114_p2)  ;;  %s359_s17 = sshll.u32 (!%p114_p2), %s354_s10, 3  ;;  %vm159_vm0 = vcmask (!%p114_p2), 261120   ;;  %vm289_vm1 = vcmask (!%p114_p2), 80896  }
   0x6   : > { %117 = sbr.rel (%p114_p2) target bundleno = 237 (0xed), region = 28  ;;  %v405_v3 = vpack.c.bf16 (!%p114_p2), %v156_v1, %v155_v0  ;;  %v158_v4 = vld [vmem:[%s494_s1 + $0x18] sm:$0xff] (!%p114_p2)  ;;  %p136_p3 = scmp.lt.s32.totalorder (!%p114_p2), %s359_s17, 15 }
   0x7   : > { %v409_v5 = vpack.c.bf16 (!%p114_p2), %v158_v4, %v157_v2 }
   0x8   : > { %406 = vmatprep.subr.bf16.mxu0 (!%p114_p2), %v405_v3  ;;  %413 = vmatprep.subr.bf16.mxu1 (!%p114_p2), %v405_v3 }
   0x9   : > { %408 = vmatpush3.bf16.msra.mxu0 (!%p114_p2), %v405_v3  ;;  %415 = vmatpush3.bf16.msra.mxu1 (!%p114_p2), %v405_v3 }
   0xa   : > { %410 = vmatprep.subr.bf16.mxu0 (!%p114_p2), %v409_v5  ;;  %414 = vmatprep.subr.bf16.mxu1 (!%p114_p2), %v409_v5 }
   0xd   : > { %s497_s17 = smov (!%p136_p3, %s359_s17), 15  ;;  %412 = vmatpush3.bf16.msra.mxu0 %v409_v5  ;;  %416 = vmatpush3.bf16.msra.mxu1 %v409_v5 }
   0xe   : > { %s360_s20 = sshll.u32 %s497_s17, 3 }
   0xf   : > { %s139_s23 = scalar_lea.vmem %s493_s0, %s360_s20  ;;  %s145_s26 = scalar_lea.vmem %s495_s2, %s360_s20 }
  0x10   : > { %v147_v6 = vld [vmem:[%s139_s23] sm:$0xff]  ;;  %v148_v8 = vld [vmem:[%s139_s23 + $0x8] sm:$0xff]  ;;  %v149_v10 = vld [vmem:[%s139_s23 + $0x10] sm:$0xff] }
  0x11   : > { %v151_v7 = vld [vmem:[%s139_s23 + $0x20] sm:$0xff]  ;;  %v152_v9 = vld [vmem:[%s139_s23 + $0x28] sm:$0xff]  ;;  %393 = vmatprep.mubr.msk.f32.mxu0 %vm159_vm0, %v147_v6  ;;  %v153_v11 = vld [vmem:[%s139_s23 + $0x30] sm:$0xff] }
  0x12   : > { %399 = vmatprep.mubr.msk.f32.mxu1 %vm159_vm0, %v151_v7  ;;  %394 = vmatmul.mubr.msk.f32.vlgmr.msra.gmra.mrb[0].mxu0 %vm159_vm0, %v148_v8  ;;  %v150_v12 = vld [vmem:[%s139_s23 + $0x18] sm:$0xff] }
  0x13   : > { %400 = vmatmul.mubr.msk.f32.vlgmr.msra.gmra.mrb[0].mxu1 %vm159_vm0, %v152_v9  ;;  %396 = vmatprep.mubr.msk.f32.mxu0 %vm159_vm0, %v149_v10  ;;  %v154_v13 = vld [vmem:[%s139_s23 + $0x38] sm:$0xff] }
  0x14   : > { %402 = vmatprep.mubr.msk.f32.mxu1 %vm159_vm0, %v153_v11 }
  0x16   : > { %397 = vmatmul.mubr.msk.f32.gmra.mrb[2].mxu0 %vm159_vm0, %v150_v12 }
  0x17   : > { %403 = vmatmul.mubr.msk.f32.gmra.mrb[2].mxu1 %vm159_vm0, %v154_v13 }
  0xe5   : > { %v395_v14 = vpop.f32.mrb[0].mxu0 }
  0xe6   : > { %v401_v15 = vpop.f32.mrb[0].mxu1  ;;  %291 = vst.msk [vmem:[%s145_s26 + $0x8] sm:$0xff] %vm289_vm1, %v395_v14  ;;  %v250_v16 = vpop.f32.mrb[1].mxu0 }
  0xe7   : > { %295 = vst.msk [vmem:[%s145_s26 + $0x28] sm:$0xff] %vm289_vm1, %v401_v15  ;;  %v270_v17 = vpop.f32.mrb[1].mxu1  ;;  %290 = vst.msk [vmem:[%s145_s26] sm:$0xff] %vm289_vm1, %v250_v16 }
  0xe8   : > { %294 = vst.msk [vmem:[%s145_s26 + $0x20] sm:$0xff] %vm289_vm1, %v270_v17 }
  0xe9   : > { %v398_v18 = vpop.f32.mrb[2].mxu0 }
  0xea   : > { %v404_v19 = vpop.f32.mrb[2].mxu1  ;;  %293 = vst.msk [vmem:[%s145_s26 + $0x18] sm:$0xff] %vm289_vm1, %v398_v18  ;;  %v260_v20 = vpop.f32.mrb[3].mxu0 }
  0xeb   : > { %297 = vst.msk [vmem:[%s145_s26 + $0x38] sm:$0xff] %vm289_vm1, %v404_v19  ;;  %v280_v21 = vpop.f32.mrb[3].mxu1  ;;  %292 = vst.msk [vmem:[%s145_s26 + $0x10] sm:$0xff] %vm289_vm1, %v260_v20 }
  0xec   : > { %296 = vst.msk [vmem:[%s145_s26 + $0x30] sm:$0xff] %vm289_vm1, %v280_v21 }
  0xed PF: > { %s12_s9 = sadd.s32 1, %s431_s9  }
  0xee   : > { %p9_p4 = scmp.ge.s32.totalorder %s12_s9, 4  }
  0xf0   :  { %11 = sbr.rel (!%p9_p4) target bundleno = 1 (0x1), region = 58 }

</bundles_post_ra>
